<compile_context>
chip_gen: v6e
topology: v6e:2x2x1
jax: 0.10.0
libtpu: 0.0.40
codegen_flags: <defaults>
</compile_context>

<pallas_src>
import functools

import jax
import jax.numpy as jnp
from jax import lax
from jax.experimental import pallas as pl
from jax.experimental.pallas import tpu as pltpu


# ---------------------- fused bidirectional LSTM recurrence kernel ----------------------

def bidir_lstm_kernel(gx_ref, mask_ref, whh_ref, h0_ref, c0_ref, yf_ref, yb_ref, *, T, H):
    """Whole-sequence recurrence, both directions, one invocation.

    gx_ref  : (T, B, 8H)  precomputed x @ [W_ih_f^T | W_ih_b^T] + (b_ih + b_hh)
    mask_ref: (T, B, 1)   1.0 where t < length[b] else 0.0
    whh_ref : (2, H, 4H)  recurrent weights [fwd, bwd], transposed
    h0/c0   : (2, B, H)   initial states [fwd, bwd]
    yf/yb   : (T, B, H)   per-direction outputs (zero at padded positions)
    """
    whh_f = whh_ref[0]                                   # (H, 4H), VMEM resident
    whh_b = whh_ref[1]

    def cell(gates, c_prev):
        # PyTorch gate order: i, f, g, o (lane slices of the (B, 4H) gate vector).
        i_g = jax.nn.sigmoid(gates[:, 0:H])
        f_g = jax.nn.sigmoid(gates[:, H:2 * H])
        g_g = jnp.tanh(gates[:, 2 * H:3 * H])
        o_g = jax.nn.sigmoid(gates[:, 3 * H:4 * H])
        c_new = f_g * c_prev + i_g * g_g
        h_new = o_g * jnp.tanh(c_new)
        return h_new, c_new

    def step(s, carry):
        h_f, c_f, h_b, c_b = carry
        t_f = s                                          # forward chain time index
        t_b = T - 1 - s                                  # backward chain time index

        gx_f = gx_ref[t_f][:, 0:4 * H]                   # (B, 4H)
        gx_b = gx_ref[t_b][:, 4 * H:8 * H]               # (B, 4H)

        # Two small independent MXU matmuls per step -> interleaved chains hide
        # MXU/EUP latency of the h->h dependency.
        gates_f = gx_f + jnp.dot(h_f, whh_f, preferred_element_type=jnp.float32)
        gates_b = gx_b + jnp.dot(h_b, whh_b, preferred_element_type=jnp.float32)

        hf_new, cf_new = cell(gates_f, c_f)
        hb_new, cb_new = cell(gates_b, c_b)

        m_f = mask_ref[t_f]                              # (B, 1) validity mask
        m_b = mask_ref[t_b]

        # Padded positions produce zeros (pad_packed_sequence behaviour).
        yf_ref[t_f] = (m_f * hf_new).astype(yf_ref.dtype)
        yb_ref[t_b] = (m_b * hb_new).astype(yb_ref.dtype)

        # States only advance on valid timesteps.
        h_f = m_f * hf_new + (1.0 - m_f) * h_f
        c_f = m_f * cf_new + (1.0 - m_f) * c_f
        h_b = m_b * hb_new + (1.0 - m_b) * h_b
        c_b = m_b * cb_new + (1.0 - m_b) * c_b
        return h_f, c_f, h_b, c_b

    init = (h0_ref[0].astype(jnp.float32), c0_ref[0].astype(jnp.float32),
            h0_ref[1].astype(jnp.float32), c0_ref[1].astype(jnp.float32))
    lax.fori_loop(0, T, step, init, unroll=min(T, 8))


def run_bidir_lstm(gx, mask, whh, h0, c0):
    T, B, _ = gx.shape
    H = whh.shape[1]
    # Whole sequence resident in VMEM, single kernel invocation (no per-step grid).
    # TODO(synk): for long sequences / large H, chunk T (emit_pipeline) to respect
    # the v7x 64 MiB VMEM budget, keep weights in bf16, and optionally split the
    # two directions across the two v7x TensorCores via core_map.
    return pl.pallas_call(
        functools.partial(bidir_lstm_kernel, T=T, H=H),
        out_shape=(jax.ShapeDtypeStruct((T, B, H), jnp.float32),
                   jax.ShapeDtypeStruct((T, B, H), jnp.float32)),
    )(gx, mask, whh, h0, c0)


# ----------------------------------- linear kernels ------------------------------------

def linear_kernel(x_ref, w_ref, b_ref, o_ref):
    o_ref[...] = (jnp.dot(x_ref[...], w_ref[...], preferred_element_type=jnp.float32)
                  + b_ref[...]).astype(o_ref.dtype)


def linear2_kernel(x1_ref, x2_ref, w1_ref, w2_ref, b_ref, o_ref):
    # y = x1 @ w1 + x2 @ w2 + b  == concat([x1, x2], -1) @ concat([w1, w2], 0) + b,
    # i.e. the bidirectional feature concat folded into the matmul (no HBM concat).
    o_ref[...] = (jnp.dot(x1_ref[...], w1_ref[...], preferred_element_type=jnp.float32)
                  + jnp.dot(x2_ref[...], w2_ref[...], preferred_element_type=jnp.float32)
                  + b_ref[...]).astype(o_ref.dtype)


def _row_tile(n_rows, block_rows):
    # TODO(synk): pad n_rows at real sizes so large non-divisible N still tiles.
    return block_rows if (n_rows % block_rows == 0) else n_rows


def run_linear(x2d, w_t, b_row, *, block_rows=512):
    N, K = x2d.shape
    O = w_t.shape[1]
    tile = _row_tile(N, block_rows)
    return pl.pallas_call(
        linear_kernel,
        out_shape=jax.ShapeDtypeStruct((N, O), jnp.float32),
        grid_spec=pltpu.PrefetchScalarGridSpec(
            num_scalar_prefetch=0,
            grid=(N // tile,),
            in_specs=[pl.BlockSpec((tile, K), lambda i: (i, 0)),
                      pl.BlockSpec((K, O), lambda i: (0, 0)),
                      pl.BlockSpec((1, O), lambda i: (0, 0))],
            out_specs=pl.BlockSpec((tile, O), lambda i: (i, 0)),
        ),
        compiler_params=pltpu.CompilerParams(dimension_semantics=("parallel",)),
    )(x2d, w_t, b_row)


def run_linear2(x1, x2, w1_t, w2_t, b_row, *, block_rows=512):
    N, K = x1.shape
    O = w1_t.shape[1]
    tile = _row_tile(N, block_rows)
    return pl.pallas_call(
        linear2_kernel,
        out_shape=jax.ShapeDtypeStruct((N, O), jnp.float32),
        grid_spec=pltpu.PrefetchScalarGridSpec(
            num_scalar_prefetch=0,
            grid=(N // tile,),
            in_specs=[pl.BlockSpec((tile, K), lambda i: (i, 0)),
                      pl.BlockSpec((tile, K), lambda i: (i, 0)),
                      pl.BlockSpec((K, O), lambda i: (0, 0)),
                      pl.BlockSpec((K, O), lambda i: (0, 0)),
                      pl.BlockSpec((1, O), lambda i: (0, 0))],
            out_specs=pl.BlockSpec((tile, O), lambda i: (i, 0)),
        ),
        compiler_params=pltpu.CompilerParams(dimension_semantics=("parallel",)),
    )(x1, x2, w1_t, w2_t, b_row)


# ------------------------------ parameter construction ---------------------------------

def init_params(key, trip_dimension, hidden_dim, n_layers, output_size):
    params = {"lstm": []}
    k = (1.0 / hidden_dim) ** 0.5
    keys = jax.random.split(key, n_layers * 2 * 4 + 2)
    idx = 0
    for layer in range(n_layers):
        layer_p = []
        in_dim = trip_dimension if layer == 0 else 2 * hidden_dim
        for _d in range(2):                       # forward / backward direction
            w_ih = jax.random.uniform(keys[idx], (4 * hidden_dim, in_dim),
                                      minval=-k, maxval=k, dtype=jnp.float32); idx += 1
            w_hh = jax.random.uniform(keys[idx], (4 * hidden_dim, hidden_dim),
                                      minval=-k, maxval=k, dtype=jnp.float32); idx += 1
            b_ih = jax.random.uniform(keys[idx], (4 * hidden_dim,),
                                      minval=-k, maxval=k, dtype=jnp.float32); idx += 1
            b_hh = jax.random.uniform(keys[idx], (4 * hidden_dim,),
                                      minval=-k, maxval=k, dtype=jnp.float32); idx += 1
            layer_p.append((w_ih, w_hh, b_ih, b_hh))
        params["lstm"].append(layer_p)
    kf = (1.0 / (2 * hidden_dim)) ** 0.5
    params["fc_w"] = jax.random.uniform(keys[idx], (output_size, 2 * hidden_dim),
                                        minval=-kf, maxval=kf, dtype=jnp.float32); idx += 1
    params["fc_b"] = jax.random.uniform(keys[idx], (output_size,),
                                        minval=-kf, maxval=kf, dtype=jnp.float32)
    return params


# ---------------------------------------- forward --------------------------------------

def modality_lstm_forward(params, input_tensor, lengths, h0, c0, hidden_dim, n_layers):
    """input_tensor: (B, T, D) batch-first; lengths: python list sorted descending."""
    B, T, _D = input_tensor.shape
    H = hidden_dim

    # Single boundary transpose on the narrow raw input (D=4); activations stay
    # time-major afterwards. TODO(synk): use bf16 activations/weights on v6e/v7x
    # (keep f32 gate math); f32 kept here for v5e-safe elementwise/EUP work.
    x_tm = jnp.transpose(input_tensor.astype(jnp.float32), (1, 0, 2))     # (T, B, D)

    # Packed-sequence validity mask, (T, B, 1) float32, computed once.
    lengths_arr = jnp.asarray(lengths, dtype=jnp.int32)
    mask = (jnp.arange(T, dtype=jnp.int32)[:, None] < lengths_arr[None, :])
    mask = mask.astype(jnp.float32).reshape(T, B, 1)

    yf = yb = None
    for layer in range(n_layers):
        (w_ih_f, w_hh_f, b_ih_f, b_hh_f), (w_ih_b, w_hh_b, b_ih_b, b_hh_b) = \
            params["lstm"][layer]
        b_cat = jnp.concatenate([b_ih_f + b_hh_f, b_ih_b + b_hh_b]).reshape(1, 8 * H)

        # Hoisted input projection for both directions: one big (T*B, D)x(D, 8H) matmul.
        if layer == 0:
            wih_cat = jnp.concatenate([w_ih_f.T, w_ih_b.T], axis=1)       # (D, 8H)
            gx = run_linear(x_tm.reshape(T * B, -1), wih_cat, b_cat)
        else:
            wih_cat = jnp.concatenate([w_ih_f.T, w_ih_b.T], axis=1)       # (2H, 8H)
            # Split the weight along the input axis so the previous layer's fwd/bwd
            # halves never need to be concatenated in HBM.
            gx = run_linear2(yf.reshape(T * B, H), yb.reshape(T * B, H),
                             wih_cat[:H], wih_cat[H:], b_cat)
        gx = gx.reshape(T, B, 8 * H)

        whh = jnp.stack([w_hh_f.T, w_hh_b.T])                              # (2, H, 4H)
        h0_l = h0[2 * layer:2 * layer + 2]                                 # (2, B, H)
        c0_l = c0[2 * layer:2 * layer + 2]
        yf, yb = run_bidir_lstm(gx, mask, whh, h0_l, c0_l)
        # TODO(synk): nn.LSTM inter-layer dropout and self.dropout are treated as
        # eval-mode identity (training-mode dropout is nondeterministic).

    # Per-timestep Linear head, with the bidirectional concat folded into the matmul.
    # TODO(synk): pad output_size up to 128 lanes at real sizes for unmasked stores.
    fc_w_t = params["fc_w"].T                                              # (2H, O)
    out = run_linear2(yf.reshape(T * B, H), yb.reshape(T * B, H),
                      fc_w_t[:H], fc_w_t[H:], params["fc_b"].reshape(1, -1))
    out = out.reshape(T, B, -1)
    out = jnp.transpose(out, (1, 0, 2))                                    # (B, T, O)
    return out, max(lengths)


# ------------------------------------------ main ---------------------------------------

if __name__ == "__main__":
    trip_dimension, output_size = 4, 3
    batch_size, hidden_dim, n_layers = 4, 32, 2
    T = 8
    lengths = [8, 7, 5, 3]            # sorted descending (pack_padded_sequence default)

    key = jax.random.PRNGKey(0)
    kx, kh, kc, kp = jax.random.split(key, 4)

    x = jax.random.normal(kx, (batch_size, T, trip_dimension), dtype=jnp.float32)
    # zero the padded tail, as a padded batch would have
    t_idx = jnp.arange(T)[None, :, None]
    len_arr = jnp.asarray(lengths)[:, None, None]
    x = jnp.where(t_idx < len_arr, x, 0.0)

    # init_hidden(): torch.randn((n_layers*2, B, H)) -> deterministic normal here
    h0 = jax.random.normal(kh, (n_layers * 2, batch_size, hidden_dim), dtype=jnp.float32)
    c0 = jax.random.normal(kc, (n_layers * 2, batch_size, hidden_dim), dtype=jnp.float32)

    params = init_params(kp, trip_dimension, hidden_dim, n_layers, output_size)

    out, max_len = modality_lstm_forward(params, x, lengths, h0, c0, hidden_dim, n_layers)
    out = jax.block_until_ready(out)
    assert out.shape == (batch_size, T, output_size)
    assert max_len == 8
    print("KERNEL_OK")
</pallas_src>

<mosaic_0001>
module attributes {stable_mosaic.version = 11 : i64} {
  func.func @linear_kernel(%arg0: i32, %arg1: memref<32x4xf32, #tpu.memory_space<vmem>>, %arg2: memref<4x256xf32, #tpu.memory_space<vmem>>, %arg3: memref<1x256xf32, #tpu.memory_space<vmem>>, %arg4: memref<32x256xf32, #tpu.memory_space<vmem>>) attributes {dimension_semantics = [#tpu.dimension_semantics<parallel>], iteration_bounds = array<i64: 1>, scalar_prefetch = 0 : i64, scratch_operands = 0 : i64, tpu.core_type = #tpu.core_type<tc>, window_params = [{transform_indices = @transform_0, window_bounds = array<i64: 32, 4>}, {pipeline_mode = #tpu.pipeline_mode<synchronous>, transform_indices = @transform_1, window_bounds = array<i64: 4, 256>}, {pipeline_mode = #tpu.pipeline_mode<synchronous>, transform_indices = @transform_2, window_bounds = array<i64: 1, 256>}, {transform_indices = @transform_3, window_bounds = array<i64: 32, 256>}]} {
    %c0 = arith.constant 0 : index
    %c0_0 = arith.constant 0 : index
    %0 = vector.load %arg1[%c0, %c0_0] : memref<32x4xf32, #tpu.memory_space<vmem>>, vector<32x4xf32>
    %c0_1 = arith.constant 0 : index
    %c0_2 = arith.constant 0 : index
    %1 = vector.load %arg2[%c0_1, %c0_2] : memref<4x256xf32, #tpu.memory_space<vmem>>, vector<4x256xf32>
    %cst = arith.constant dense<0.000000e+00> : vector<32x256xf32>
    %2 = tpu.matmul %0, %1, %cst {dimension_numbers = #tpu.dot_dimension_numbers<[1], [0], [0], [1], [0, 0, 1, 1], [], []>} : vector<32x4xf32>, vector<4x256xf32>, vector<32x256xf32> -> vector<32x256xf32>
    %c0_3 = arith.constant 0 : index
    %c0_4 = arith.constant 0 : index
    %3 = vector.load %arg3[%c0_3, %c0_4] : memref<1x256xf32, #tpu.memory_space<vmem>>, vector<1x256xf32>
    %4 = vector.broadcast %3 : vector<1x256xf32> to vector<32x256xf32>
    %5 = arith.addf %2, %4 : vector<32x256xf32>
    %c0_5 = arith.constant 0 : index
    %c0_6 = arith.constant 0 : index
    %6 = vector.load %arg4[%c0_5, %c0_6] : memref<32x256xf32, #tpu.memory_space<vmem>>, vector<32x256xf32>
    tpu.vector_store %arg4[%c0_5, %c0_6], %5 {strides = array<i32>} : memref<32x256xf32, #tpu.memory_space<vmem>>, vector<32x256xf32>,
    return
  }
  func.func @transform_0(%arg0: i32) -> (i32, i32) {
    %c0_i32 = arith.constant 0 : i32
    %c0_i32_0 = arith.constant 0 : i32
    return %arg0, %c0_i32 : i32, i32
  }
  func.func @transform_1(%arg0: i32) -> (i32, i32) {
    %c0_i32 = arith.constant 0 : i32
    %c0_i32_0 = arith.constant 0 : i32
    %c0_i32_1 = arith.constant 0 : i32
    return %c0_i32, %c0_i32_0 : i32, i32
  }
  func.func @transform_2(%arg0: i32) -> (i32, i32) {
    %c0_i32 = arith.constant 0 : i32
    %c0_i32_0 = arith.constant 0 : i32
    %c0_i32_1 = arith.constant 0 : i32
    return %c0_i32, %c0_i32_0 : i32, i32
  }
  func.func @transform_3(%arg0: i32) -> (i32, i32) {
    %c0_i32 = arith.constant 0 : i32
    %c0_i32_0 = arith.constant 0 : i32
    return %arg0, %c0_i32 : i32, i32
  }
}

</mosaic_0001>

<bundles_post_ra>
// kernel: tpu_custom_call.1
= control target key start
LH: loop header
LB: loop body
LE: loop exit
PB: predicated region body
PF: predicated region fallthrough
CT: control target
= control target key end

     0   :  { %vm47_vm0 = vcmask 1043456   ;;  %v200_v2 = vmov 0.0   ;;  %vm34_vm1 = vcmask 31744   ;;  %s245_s0 = inlined_call_operand.vmem [shape: f32[32,4], index: 0, kind: input, shape index: {}]   ;;  %s246_s1 = inlined_call_operand.vmem [shape: f32[4,256], index: 1, kind: input, shape index: {}]   ;;  %s247_s2 = inlined_call_operand.vmem [shape: f32[1,256], index: 2, kind: input, shape index: {}]   ;;  %s248_s3 = inlined_call_operand.hbm [shape: f32[32,256], index: 3, kind: output, shape index: {}]  }
   0x1   :  { %v19_v0 = vld [vmem:[%s246_s1] sm:$0xff]  ;;  %116 = vmatprep.mubr.f32.mxu0 %v200_v2  ;;  %128 = vmatprep.mubr.f32.mxu1 %v200_v2  ;;  %v17_v4 = vld [vmem:[%s245_s0 + $0x10] sm:$0xff] }
   0x2   :  { %v33_v1 = vcombine.high %v19_v0, %v19_v0  ;;  %v15_v3 = vld [vmem:[%s245_s0] sm:$0xff] }
   0x3   :  { %8 = vsyncpa [#allocation3], 0  ;;  %v16_v5 = vld [vmem:[%s245_s0 + $0x8] sm:$0xff]  ;;  %v18_v6 = vld [vmem:[%s245_s0 + $0x18] sm:$0xff]  ;;  %v22_v7 = vlaneseq  ;;  %s201_s0 = smov [#allocation2]  }
   0x4   :  { %165 = vmatprep.subr.msk.mxu0 %vm47_vm0, %v33_v1  ;;  %171 = vmatprep.subr.msk.mxu1 %vm47_vm0, %v33_v1  ;;  %v20_v10 = vld [vmem:[%s247_s2] sm:$0x3]  ;;  %s154_s23 = sshll.u32 %s201_s0, 4  ;;  %s155_s23 = int_to_ptr.vmem [resolvable:$true] %s154_s23 }
   0x5   :  { %166 = vmatpush1.msk.msra.mxu0 %vm47_vm0, %v19_v0  ;;  %172 = vmatpush1.msk.msra.mxu1 %vm47_vm0, %v19_v0  ;;  %v23_v8 = vshrl.u32 %v22_v7, 7  ;;  %s178_s2 = scalar_lea.vmem %s155_s23, 1024  ;;  %p183_p1 = scmp.lt.s32.totalorder %s155_s23, %s155_s23 }
   0x6   :  { %167 = vmatmul.mubr.msk.f32.vlgmr.msra.gmra.mxu0 %vm34_vm1, %v15_v3  ;;  %169 = vmatmul.mubr.msk.f32.vlgmr.msra.gmra.mxu1 %vm34_vm1, %v17_v4  ;;  %p179_p0 = scmp.ne.s32.totalorder %s155_s23, %s178_s2  ;;  %p184_p2 = scmp.lt.s32.totalorder %s178_s2, %s178_s2 }
   0x7   :  { %122 = vmatprep.mubr.f32.mxu0 %v200_v2  ;;  %134 = vmatprep.mubr.f32.mxu1 %v200_v2  ;;  %v24_v9 = vsub.s32 0, %v23_v8  ;;  %v28_v11 = vsub.s32 1, %v23_v8 }
   0x8   :  { %p185_p3 = por %p184_p2, %p183_p1 }
   0x9   :  { %v25_v12 = vrot.slane %v20_v10, %v24_v9  ;;  %v29_v13 = vrot.slane %v20_v10, %v28_v11 }
   0xa   :  { %168 = vmatmul.mubr.msk.f32.gmra.mxu0 %vm34_vm1, %v16_v5  ;;  %170 = vmatmul.mubr.msk.f32.gmra.mxu1 %vm34_vm1, %v18_v6  ;;  %p186_p4 = pnand %p185_p3, %p179_p0 }
  0xc6   :  { %v118_v14 = vpop.f32.mrf.mxu0  ;;  %v130_v15 = vpop.f32.mrf.mxu1 }
  0xc7   :  { %v119_v16 = vadd.f32 %v118_v14, %v25_v12  ;;  %v131_v17 = vadd.f32 %v130_v15, %v25_v12 }
  0xc8   :  { %v120_v18 = vpop.f32.mrf.mxu0  ;;  %v132_v19 = vpop.f32.mrf.mxu1 }
  0xc9   :  { %141 = vst [vmem:[#allocation2] sm:$0xff] %v119_v16  ;;  %145 = vst [vmem:[#allocation2 + $0x20] sm:$0xff] %v131_v17  ;;  %v121_v20 = vadd.f32 %v120_v18, %v29_v13  ;;  %v133_v21 = vadd.f32 %v132_v19, %v29_v13 }
  0xca   :  { %v124_v22 = vpop.f32.mrf.mxu0  ;;  %v136_v23 = vpop.f32.mrf.mxu1 }
  0xcb   :  { %142 = vst [vmem:[#allocation2 + $0x8] sm:$0xff] %v121_v20  ;;  %146 = vst [vmem:[#allocation2 + $0x28] sm:$0xff] %v133_v21  ;;  %v125_v24 = vadd.f32 %v124_v22, %v25_v12  ;;  %v137_v25 = vadd.f32 %v136_v23, %v25_v12 }
  0xcc   :  { %v126_v26 = vpop.f32.mrf.mxu0  ;;  %v138_v27 = vpop.f32.mrf.mxu1 }
  0xcd   :  { %143 = vst [vmem:[#allocation2 + $0x10] sm:$0xff] %v125_v24  ;;  %147 = vst [vmem:[#allocation2 + $0x30] sm:$0xff] %v137_v25  ;;  %v127_v28 = vadd.f32 %v126_v26, %v29_v13  ;;  %v139_v29 = vadd.f32 %v138_v27, %v29_v13 }
  0xcf   :  { %144 = vst [vmem:[#allocation2 + $0x18] sm:$0xff] %v127_v28  ;;  %148 = vst [vmem:[#allocation2 + $0x38] sm:$0xff] %v139_v29 }
  0xd0   :  { %189 = shalt.err (!%p186_p4)
}
  0xd1   :  { %s202_s24 = smov 256   ;;  %s203_s25 = smov 16  }
  0xd2   :  { %160 = dma.vmem_to_hbm [thread:$0]  %s155_s23, 1024, %s248_s3, [#allocation3], %s202_s24, %s202_s24, %s203_s25  }
  0xd3   :  { %198 = dma.done.wait [#allocation3], 1024  }
  0xd4   :  { %199 = vsyncadd [#allocation3], 4294966272 }
  0xd5   :  { %164 = vsyncpa [#allocation3], 1 }

</bundles_post_ra>
